<compile_context>
chip_gen: v7x
topology: tpu7x:2x2x1
jax: 0.10.0
libtpu: 0.0.40
codegen_flags: <defaults>
</compile_context>

<pallas_src>
import functools

import jax
import jax.numpy as jnp
from jax.experimental import pallas as pl
from jax.experimental.pallas import tpu as pltpu


def _round_up(n, m):
    return ((n + m - 1) // m) * m


def _device_kind():
    try:
        return jax.devices()[0].device_kind.lower()
    except Exception:  # pragma: no cover - defensive, e.g. no devices at trace
        return ""


def _default_block_m():
    kind = _device_kind()
    if "v5" in kind:
        # v5e: 4x128^2 MXU, 16 MiB default scoped VMEM, single vst slot.
        return 128
    # v6e / v7x: big M tiles amortize the ~0.35 us per-grid-step overhead.
    return 512


def _num_tensorcores():
    # Only v7x has 2 TensorCores per chip; v5e/v6e are single-TC.
    return 2 if "v7" in _device_kind() else 1


def _choose_block_m(batch, requested, num_cores):
    bm = min(requested, _round_up(batch, 8))
    if num_cores > 1 and pl.cdiv(batch, bm) < num_cores and bm > 8:
        # Split into >=2 grid steps so both v7x TensorCores get work
        # (e.g. B=300 -> bm=152, only 4 masked rows in the last block).
        bm = max(8, _round_up(pl.cdiv(batch, num_cores), 8))
    return bm


def _mlp_kernel(x_ref, w1_ref, b1_ref, w2_ref, b2_ref, w3_ref, b3_ref, o_ref,
                *, compute_dtype):
    # Cast the x tile in-kernel (VPU cast hides under the MXU); weights arrive
    # already in compute_dtype.  All matmuls accumulate in f32; bias + ReLU
    # epilogues stay f32 on the VPU.
    x = x_ref[...].astype(compute_dtype)
    h1 = jnp.dot(x, w1_ref[...], preferred_element_type=jnp.float32)
    h1 = jnp.maximum(h1 + b1_ref[...], 0.0)
    h2 = jnp.dot(h1.astype(compute_dtype), w2_ref[...],
                 preferred_element_type=jnp.float32)
    h2 = jnp.maximum(h2 + b2_ref[...], 0.0)
    out = jnp.dot(h2.astype(compute_dtype), w3_ref[...],
                  preferred_element_type=jnp.float32)
    o_ref[...] = (out + b3_ref[...]).astype(o_ref.dtype)


@functools.partial(jax.jit, static_argnames=("block_m", "compute_dtype"))
def combine_mlp_forward(x, params, block_m=None, compute_dtype=jnp.bfloat16):
    """x: (B, 4*E).  params: dict of w1,b1,w2,b2,w3,b3 with (in, out) weights."""
    # Weights are fetched once -> cast them in the wrapper.  x is NOT cast here
    # (that would be an extra full HBM pass); it is cast per-tile in the kernel.
    w1 = params["w1"].astype(compute_dtype)
    w2 = params["w2"].astype(compute_dtype)
    w3 = params["w3"].astype(compute_dtype)
    # Biases stay f32: the bias/ReLU epilogue runs in f32 regardless of MXU dtype.
    b1 = params["b1"].astype(jnp.float32).reshape(1, -1)
    b2 = params["b2"].astype(jnp.float32).reshape(1, -1)
    b3 = params["b3"].astype(jnp.float32).reshape(1, -1)

    B, d_in = x.shape
    d_h1 = w1.shape[1]
    d_h2 = w2.shape[1]
    d_out = w3.shape[1]

    if block_m is None:
        block_m = _default_block_m()
    bm = _choose_block_m(B, block_m, _num_tensorcores())
    grid = (pl.cdiv(B, bm),)  # ragged last block is masked by Pallas

    # Resident (constant index_map) weights/biases: single-buffered to halve
    # their VMEM footprint (matters on v7x's 64 MiB VMEM).
    def resident(arr):
        return pl.BlockSpec(arr.shape, lambda i: (0, 0),
                            pipeline_mode=pl.Buffered(1))

    itemsize_c = jnp.dtype(compute_dtype).itemsize
    itemsize_x = x.dtype.itemsize
    w_bytes = (d_in * d_h1 + d_h1 * d_h2 + d_h2 * d_out) * itemsize_c
    bias_bytes = (d_h1 + d_h2 + d_out) * 4

    # Explicit VMEM budget: x/out tiles are double-buffered, weights single.
    est_vmem = (2 * bm * d_in * itemsize_x + 2 * bm * d_out * itemsize_x
                + w_bytes + bias_bytes)
    vmem_limit = int(min(max(2 * est_vmem, 16 << 20), 64 << 20))

    cost = pl.CostEstimate(
        flops=2 * B * (d_in * d_h1 + d_h1 * d_h2 + d_h2 * d_out),
        transcendentals=0,
        bytes_accessed=(B * d_in * itemsize_x          # single x read (f32)
                        + w_bytes + bias_bytes         # weights/biases once
                        + B * d_out * itemsize_x),     # unpadded output write
    )

    kernel = functools.partial(_mlp_kernel, compute_dtype=compute_dtype)

    out = pl.pallas_call(
        kernel,
        out_shape=jax.ShapeDtypeStruct((B, d_out), x.dtype),
        grid_spec=pltpu.PrefetchScalarGridSpec(
            num_scalar_prefetch=0,
            grid=grid,
            in_specs=[
                pl.BlockSpec((bm, d_in), lambda i: (i, 0)),  # x M-tile
                resident(w1), resident(b1),
                resident(w2), resident(b2),
                resident(w3), resident(b3),
            ],
            out_specs=pl.BlockSpec((bm, d_out), lambda i: (i, 0)),
        ),
        compiler_params=pltpu.CompilerParams(
            dimension_semantics=("parallel",),
            vmem_limit_bytes=vmem_limit),
        cost_estimate=cost,
    )(x, w1, b1, w2, b2, w3, b3)

    return out


def init_params(key, embed_dim):
    """Deterministic init mirroring init_weights: normal(mean=0, std=0.01)."""
    d_in, d_h1, d_h2, d_out = 4 * embed_dim, 8 * embed_dim, 4 * embed_dim, embed_dim
    ks = jax.random.split(key, 6)
    std = 0.01
    return {
        "w1": std * jax.random.normal(ks[0], (d_in, d_h1), jnp.float32),
        "b1": std * jax.random.normal(ks[1], (d_h1,), jnp.float32),
        "w2": std * jax.random.normal(ks[2], (d_h1, d_h2), jnp.float32),
        "b2": std * jax.random.normal(ks[3], (d_h2,), jnp.float32),
        "w3": std * jax.random.normal(ks[4], (d_h2, d_out), jnp.float32),
        "b3": std * jax.random.normal(ks[5], (d_out,), jnp.float32),
    }


def reference_forward(x, params):
    h1 = jnp.maximum(x @ params["w1"] + params["b1"], 0.0)
    h2 = jnp.maximum(h1 @ params["w2"] + params["b2"], 0.0)
    return h2 @ params["w3"] + params["b3"]


if __name__ == "__main__":
    embed_dim = 32          # input features = 4E = 128, hidden = 256 / 128, out = 32
    key = jax.random.PRNGKey(0)
    k_x, k_p, k_x2 = jax.random.split(key, 3)
    params = init_params(k_p, embed_dim)

    # Small shape: batch=8 -> single (8, 128) tile, masked 32-lane output store.
    # Default compute_dtype is bf16 (f32 MXU accumulation), so looser tolerance
    # vs the f32 reference.
    x_small = jax.random.normal(k_x, (8, 4 * embed_dim), jnp.float32)
    out_small = jax.block_until_ready(combine_mlp_forward(x_small, params))
    ref_small = reference_forward(x_small, params)
    assert out_small.shape == (8, embed_dim)
    assert jnp.allclose(out_small, ref_small, atol=5e-3, rtol=5e-2), "bf16 small mismatch"

    # Non-multiple batch: exercises the ragged last grid block (no jnp.pad, no
    # row slice) with the f32 MXU opt-in path; tight tolerance vs reference.
    x_big = jax.random.normal(k_x2, (300, 4 * embed_dim), jnp.float32)
    out_big = jax.block_until_ready(
        combine_mlp_forward(x_big, params, compute_dtype=jnp.float32))
    ref_big = reference_forward(x_big, params)
    assert out_big.shape == (300, embed_dim)
    assert jnp.allclose(out_big, ref_big, atol=2e-5, rtol=1e-3), "f32 big mismatch"

    # Default bf16 fast path on the same non-multiple batch.
    out_bf16 = jax.block_until_ready(combine_mlp_forward(x_big, params))
    assert out_bf16.shape == (300, embed_dim)
    assert jnp.allclose(out_bf16, ref_big, atol=5e-3, rtol=5e-2), "bf16 big mismatch"

    print("KERNEL_OK")
</pallas_src>

<mosaic_0001>
module attributes {stable_mosaic.version = 11 : i64} {
  func.func @_mlp_kernel(%arg0: i32, %arg1: memref<8x128xf32, #tpu.memory_space<vmem>>, %arg2: memref<128x256xbf16, #tpu.memory_space<vmem>>, %arg3: memref<1x256xf32, #tpu.memory_space<vmem>>, %arg4: memref<256x128xbf16, #tpu.memory_space<vmem>>, %arg5: memref<1x128xf32, #tpu.memory_space<vmem>>, %arg6: memref<128x32xbf16, #tpu.memory_space<vmem>>, %arg7: memref<1x32xf32, #tpu.memory_space<vmem>>, %arg8: memref<8x32xf32, #tpu.memory_space<vmem>>) attributes {dimension_semantics = [#tpu.dimension_semantics<parallel>], iteration_bounds = array<i64: 1>, scalar_prefetch = 0 : i64, scratch_operands = 0 : i64, tpu.core_type = #tpu.core_type<tc>, window_params = [{transform_indices = @transform_0, window_bounds = array<i64: 8, 128>}, {pipeline_mode = #tpu.pipeline_mode<synchronous>, transform_indices = @transform_1, window_bounds = array<i64: 128, 256>}, {pipeline_mode = #tpu.pipeline_mode<synchronous>, transform_indices = @transform_2, window_bounds = array<i64: 1, 256>}, {pipeline_mode = #tpu.pipeline_mode<synchronous>, transform_indices = @transform_3, window_bounds = array<i64: 256, 128>}, {pipeline_mode = #tpu.pipeline_mode<synchronous>, transform_indices = @transform_4, window_bounds = array<i64: 1, 128>}, {pipeline_mode = #tpu.pipeline_mode<synchronous>, transform_indices = @transform_5, window_bounds = array<i64: 128, 32>}, {pipeline_mode = #tpu.pipeline_mode<synchronous>, transform_indices = @transform_6, window_bounds = array<i64: 1, 32>}, {transform_indices = @transform_7, window_bounds = array<i64: 8, 32>}]} {
    %c0 = arith.constant 0 : index
    %c0_0 = arith.constant 0 : index
    %0 = vector.load %arg1[%c0, %c0_0] : memref<8x128xf32, #tpu.memory_space<vmem>>, vector<8x128xf32>
    %1 = arith.truncf %0 : vector<8x128xf32> to vector<8x128xbf16>
    %c0_1 = arith.constant 0 : index
    %c0_2 = arith.constant 0 : index
    %2 = vector.load %arg2[%c0_1, %c0_2] : memref<128x256xbf16, #tpu.memory_space<vmem>>, vector<128x256xbf16>
    %cst = arith.constant dense<0.000000e+00> : vector<8x256xf32>
    %3 = tpu.matmul %1, %2, %cst {dimension_numbers = #tpu.dot_dimension_numbers<[1], [0], [0], [1], [0, 0, 1, 1], [], []>} : vector<8x128xbf16>, vector<128x256xbf16>, vector<8x256xf32> -> vector<8x256xf32>
    %c0_3 = arith.constant 0 : index
    %c0_4 = arith.constant 0 : index
    %4 = vector.load %arg3[%c0_3, %c0_4] : memref<1x256xf32, #tpu.memory_space<vmem>>, vector<1x256xf32>
    %5 = vector.broadcast %4 : vector<1x256xf32> to vector<8x256xf32>
    %6 = arith.addf %3, %5 : vector<8x256xf32>
    %cst_5 = arith.constant 0.000000e+00 : f32
    %7 = vector.broadcast %cst_5 : f32 to vector<8x256xf32>
    %8 = arith.maximumf %6, %7 : vector<8x256xf32>
    %9 = arith.truncf %8 : vector<8x256xf32> to vector<8x256xbf16>
    %c0_6 = arith.constant 0 : index
    %c0_7 = arith.constant 0 : index
    %10 = vector.load %arg4[%c0_6, %c0_7] : memref<256x128xbf16, #tpu.memory_space<vmem>>, vector<256x128xbf16>
    %cst_8 = arith.constant dense<0.000000e+00> : vector<8x128xf32>
    %11 = tpu.matmul %9, %10, %cst_8 {dimension_numbers = #tpu.dot_dimension_numbers<[1], [0], [0], [1], [0, 0, 1, 1], [], []>} : vector<8x256xbf16>, vector<256x128xbf16>, vector<8x128xf32> -> vector<8x128xf32>
    %c0_9 = arith.constant 0 : index
    %c0_10 = arith.constant 0 : index
    %12 = vector.load %arg5[%c0_9, %c0_10] : memref<1x128xf32, #tpu.memory_space<vmem>>, vector<1x128xf32>
    %13 = vector.broadcast %12 : vector<1x128xf32> to vector<8x128xf32>
    %14 = arith.addf %11, %13 : vector<8x128xf32>
    %cst_11 = arith.constant 0.000000e+00 : f32
    %15 = vector.broadcast %cst_11 : f32 to vector<8x128xf32>
    %16 = arith.maximumf %14, %15 : vector<8x128xf32>
    %17 = arith.truncf %16 : vector<8x128xf32> to vector<8x128xbf16>
    %c0_12 = arith.constant 0 : index
    %c0_13 = arith.constant 0 : index
    %18 = vector.load %arg6[%c0_12, %c0_13] : memref<128x32xbf16, #tpu.memory_space<vmem>>, vector<128x32xbf16>
    %cst_14 = arith.constant dense<0.000000e+00> : vector<8x32xf32>
    %19 = tpu.matmul %17, %18, %cst_14 {dimension_numbers = #tpu.dot_dimension_numbers<[1], [0], [0], [1], [0, 0, 1, 1], [], []>} : vector<8x128xbf16>, vector<128x32xbf16>, vector<8x32xf32> -> vector<8x32xf32>
    %c0_15 = arith.constant 0 : index
    %c0_16 = arith.constant 0 : index
    %20 = vector.load %arg7[%c0_15, %c0_16] : memref<1x32xf32, #tpu.memory_space<vmem>>, vector<1x32xf32>
    %21 = vector.broadcast %20 : vector<1x32xf32> to vector<8x32xf32>
    %22 = arith.addf %19, %21 : vector<8x32xf32>
    %c0_17 = arith.constant 0 : index
    %c0_18 = arith.constant 0 : index
    %23 = vector.load %arg8[%c0_17, %c0_18] : memref<8x32xf32, #tpu.memory_space<vmem>>, vector<8x32xf32>
    tpu.vector_store %arg8[%c0_17, %c0_18], %22 {strides = array<i32>} : memref<8x32xf32, #tpu.memory_space<vmem>>, vector<8x32xf32>,
    return
  }
  func.func @transform_0(%arg0: i32) -> (i32, i32) {
    %c0_i32 = arith.constant 0 : i32
    %c0_i32_0 = arith.constant 0 : i32
    return %arg0, %c0_i32 : i32, i32
  }
  func.func @transform_1(%arg0: i32) -> (i32, i32) {
    %c0_i32 = arith.constant 0 : i32
    %c0_i32_0 = arith.constant 0 : i32
    %c0_i32_1 = arith.constant 0 : i32
    return %c0_i32, %c0_i32_0 : i32, i32
  }
  func.func @transform_2(%arg0: i32) -> (i32, i32) {
    %c0_i32 = arith.constant 0 : i32
    %c0_i32_0 = arith.constant 0 : i32
    %c0_i32_1 = arith.constant 0 : i32
    return %c0_i32, %c0_i32_0 : i32, i32
  }
  func.func @transform_3(%arg0: i32) -> (i32, i32) {
    %c0_i32 = arith.constant 0 : i32
    %c0_i32_0 = arith.constant 0 : i32
    %c0_i32_1 = arith.constant 0 : i32
    return %c0_i32, %c0_i32_0 : i32, i32
  }
  func.func @transform_4(%arg0: i32) -> (i32, i32) {
    %c0_i32 = arith.constant 0 : i32
    %c0_i32_0 = arith.constant 0 : i32
    %c0_i32_1 = arith.constant 0 : i32
    return %c0_i32, %c0_i32_0 : i32, i32
  }
  func.func @transform_5(%arg0: i32) -> (i32, i32) {
    %c0_i32 = arith.constant 0 : i32
    %c0_i32_0 = arith.constant 0 : i32
    %c0_i32_1 = arith.constant 0 : i32
    return %c0_i32, %c0_i32_0 : i32, i32
  }
  func.func @transform_6(%arg0: i32) -> (i32, i32) {
    %c0_i32 = arith.constant 0 : i32
    %c0_i32_0 = arith.constant 0 : i32
    %c0_i32_1 = arith.constant 0 : i32
    return %c0_i32, %c0_i32_0 : i32, i32
  }
  func.func @transform_7(%arg0: i32) -> (i32, i32) {
    %c0_i32 = arith.constant 0 : i32
    %c0_i32_0 = arith.constant 0 : i32
    return %arg0, %c0_i32 : i32, i32
  }
}

</mosaic_0001>

<bundles_post_ra>
// kernel: combine_mlp_forward.1
= control target key start
LH: loop header
LB: loop body
LE: loop exit
PB: predicated region body
PF: predicated region fallthrough
CT: control target
= control target key end

     0   :  { %v656_v2 = vmov 0   ;;  %s844_s0 = inlined_call_operand.vmem [shape: f32[8,128], index: 0, kind: input, shape index: {}]   ;;  %s845_s1 = inlined_call_operand.vmem [shape: bf16[128,256], index: 1, kind: input, shape index: {}]   ;;  %s846_s2 = inlined_call_operand.vmem [shape: f32[1,256], index: 2, kind: input, shape index: {}]   ;;  %s847_s3 = inlined_call_operand.vmem [shape: bf16[256,128], index: 3, kind: input, shape index: {}]   ;;  %s848_s4 = inlined_call_operand.vmem [shape: f32[1,128], index: 4, kind: input, shape index: {}]   ;;  %s849_s5 = inlined_call_operand.vmem [shape: bf16[128,32], index: 5, kind: input, shape index: {}]   ;;  %s850_s6 = inlined_call_operand.vmem [shape: f32[1,32], index: 6, kind: input, shape index: {}]   ;;  %s851_s7 = inlined_call_operand.hbm [shape: f32[8,32], index: 7, kind: output, shape index: {}]  }
   0x1   :  { %v584_v0 = vld [vmem:[%s845_s1 + $0x4] ss:$8 sps:$4 sm:$0xff]   ;;  %v586_v1 = vld [vmem:[%s845_s1] ss:$8 sps:$4 sm:$0xff]   ;;  %170 = vmatprep.mubr.bf16.mxu0 %v656_v2  ;;  %v587_v3 = vld [vmem:[%s845_s1 + $0x14] ss:$8 sps:$4 sm:$0xff]  }
   0x2   :  { %138 = vmatprep.subr.bf16.mxu0 %v584_v0  ;;  %v589_v4 = vld [vmem:[%s845_s1 + $0x10] ss:$8 sps:$4 sm:$0xff]   ;;  %v590_v5 = vld [vmem:[%s845_s1 + $0x24] ss:$8 sps:$4 sm:$0xff]   ;;  %v592_v6 = vld [vmem:[%s845_s1 + $0x20] ss:$8 sps:$4 sm:$0xff]  }
   0x3   :  { %139 = vmatpush1.bf16.msra.mxu0 %v586_v1  ;;  %v593_v7 = vld [vmem:[%s845_s1 + $0x34] ss:$8 sps:$4 sm:$0xff]   ;;  %v595_v8 = vld [vmem:[%s845_s1 + $0x30] ss:$8 sps:$4 sm:$0xff]   ;;  %v596_v9 = vld [vmem:[%s845_s1 + $0x44] ss:$8 sps:$4 sm:$0xff]  }
   0x4   :  { %140 = vmatprep.subr.bf16.mxu0 %v587_v3  ;;  %v608_v10 = vld [vmem:[%s847_s3 + $0x40] sm:$0xff]   ;;  %v610_v13 = vld [vmem:[%s847_s3 + $0x48] sm:$0xff]   ;;  %v612_v15 = vld [vmem:[%s847_s3 + $0x50] sm:$0xff]  }
   0x5   :  { %v609_v11 = vld [vmem:[%s847_s3] sm:$0xff]   ;;  %529 = vmatprep.subr.bf16.mxu1 %v608_v10  ;;  %v611_v14 = vld [vmem:[%s847_s3 + $0x8] sm:$0xff]   ;;  %v599_v16 = vld [vmem:[%s845_s1 + $0x54] ss:$8 sps:$4 sm:$0xff]  }
   0x6   :  { %v598_v12 = vld [vmem:[%s845_s1 + $0x40] ss:$8 sps:$4 sm:$0xff]   ;;  %530 = vmatpush3.bf16.msra.mxu1 %v609_v11  ;;  %v601_v17 = vld [vmem:[%s845_s1 + $0x50] ss:$8 sps:$4 sm:$0xff]   ;;  %v602_v20 = vld [vmem:[%s845_s1 + $0x64] ss:$8 sps:$4 sm:$0xff]  }
   0x7   :  { %141 = vmatpush1.bf16.msra.mxu0 %v589_v4  ;;  %531 = vmatprep.subr.bf16.mxu1 %v610_v13  ;;  %v613_v18 = vld [vmem:[%s847_s3 + $0x10] sm:$0xff]   ;;  %v614_v19 = vld [vmem:[%s847_s3 + $0x58] sm:$0xff]   ;;  %v604_v21 = vld [vmem:[%s845_s1 + $0x60] ss:$8 sps:$4 sm:$0xff]  }
   0x8   :  { %142 = vmatprep.subr.bf16.mxu0 %v590_v5  ;;  %v605_v22 = vld [vmem:[%s845_s1 + $0x74] ss:$8 sps:$4 sm:$0xff]   ;;  %v616_v24 = vld [vmem:[%s847_s3 + $0x60] sm:$0xff]   ;;  %v607_v26 = vld [vmem:[%s845_s1 + $0x70] ss:$8 sps:$4 sm:$0xff]  }
   0x9   :  { %v615_v23 = vld [vmem:[%s847_s3 + $0x18] sm:$0xff]   ;;  %v617_v25 = vld [vmem:[%s847_s3 + $0x20] sm:$0xff]   ;;  %v618_v28 = vld [vmem:[%s847_s3 + $0x68] sm:$0xff]  }
   0xa   :  { %532 = vmatpush3.bf16.msra.mxu1 %v611_v14  ;;  %v28_v27 = vld [vmem:[%s844_s0] sm:$0xff]  ;;  %v619_v29 = vld [vmem:[%s847_s3 + $0x28] sm:$0xff]  }
   0xb   :  { %143 = vmatpush1.bf16.msra.mxu0 %v592_v6  ;;  %533 = vmatprep.subr.bf16.mxu1 %v612_v15  ;;  %v29_v30 = vpack.c.bf16 %v28_v27, %v28_v27 }
   0xc   :  { %144 = vmatprep.subr.bf16.mxu0 %v593_v7 }
   0xe   :  { %534 = vmatpush3.bf16.msra.mxu1 %v613_v18 }
   0xf   :  { %145 = vmatpush1.bf16.msra.mxu0 %v595_v8  ;;  %535 = vmatprep.subr.bf16.mxu1 %v614_v19 }
  0x10   :  { %146 = vmatprep.subr.bf16.mxu0 %v596_v9 }
  0x12   :  { %536 = vmatpush3.bf16.msra.mxu1 %v615_v23 }
  0x13   :  { %147 = vmatpush1.bf16.msra.mxu0 %v598_v12  ;;  %537 = vmatprep.subr.bf16.mxu1 %v616_v24 }
  0x14   :  { %148 = vmatprep.subr.bf16.mxu0 %v599_v16 }
  0x16   :  { %538 = vmatpush3.bf16.msra.mxu1 %v617_v25 }
  0x17   :  { %149 = vmatpush1.bf16.msra.mxu0 %v601_v17  ;;  %539 = vmatprep.subr.bf16.mxu1 %v618_v28 }
  0x18   :  { %150 = vmatprep.subr.bf16.mxu0 %v602_v20 }
  0x1b   :  { %151 = vmatpush1.bf16.msra.mxu0 %v604_v21 }
  0x1c   :  { %152 = vmatprep.subr.bf16.mxu0 %v605_v22 }
  0x1f   :  { %153 = vmatpush1.bf16.msra.mxu0 %v607_v26 }
  0x20   :  { %12 = vsyncpa [#allocation3], 0  ;;  %540 = vmatpush3.bf16.msra.mxu1 %v619_v29  ;;  %v620_v31 = vld [vmem:[%s847_s3 + $0x70] sm:$0xff]   ;;  %v622_v33 = vld [vmem:[%s847_s3 + $0x78] sm:$0xff]   ;;  %v657_v36 = vmov 0.0   ;;  %v48_v42 = vlaneseq  ;;  %vm658_vm0 = vmmov 0  }
  0x21   :  { %v621_v32 = vld [vmem:[%s847_s3 + $0x30] sm:$0xff]   ;;  %541 = vmatprep.subr.bf16.mxu1 %v620_v31  ;;  %v623_v34 = vld [vmem:[%s847_s3 + $0x38] sm:$0xff]   ;;  %v624_v35 = vld [vmem:[%s849_s5] sm:$0xff]   ;;  %560 = vmatprep.subr.bf16.mxu0 %v657_v36  ;;  %vm471_vm1 = vcmask 261120  }
  0x22   :  { %171 = vmatmul.mubr.bf16.vlgmr.msra.gmra.mrb[0].mxu0 %v29_v30  ;;  %v625_v37 = vld [vmem:[%s849_s5 + $0x8] sm:$0xff]   ;;  %v626_v38 = vld [vmem:[%s849_s5 + $0x10] sm:$0xff]   ;;  %v627_v39 = vld [vmem:[%s849_s5 + $0x18] sm:$0xff]   ;;  %v49_v43 = vshrl.u32 %v48_v42, 7 }
  0x23   :  { %561 = vmatpush3.bf16.msra.mxu0 %v624_v35  ;;  %v628_v40 = vld [vmem:[%s849_s5 + $0x20] sm:$0xff]   ;;  %v629_v41 = vld [vmem:[%s849_s5 + $0x28] sm:$0xff]   ;;  %v630_v59 = vld [vmem:[%s849_s5 + $0x30] sm:$0xff]   ;;  %576 = vmatprep.mubr.msk.bf16.mxu0 %vm658_vm0, %v657_v36 }
  0x24   :  { %542 = vmatpush3.bf16.msra.mxu1 %v621_v32  ;;  %562 = vmatprep.subr.bf16.mxu0 %v657_v36  ;;  %v50_v44 = vsub.s32 0, %v49_v43  ;;  %v46_v45 = vld [vmem:[%s846_s2] sm:$0x3]  ;;  %v54_v46 = vsub.s32 1, %v49_v43  ;;  %v631_v60 = vld [vmem:[%s849_s5 + $0x38] sm:$0xff]   ;;  %s659_s5 = smov [#allocation2]  }
  0x25   :  { %543 = vmatprep.subr.bf16.mxu1 %v622_v33  ;;  %v503_v62 = vld [vmem:[%s848_s4] ss:$0 sm:$0xff]  ;;  %s479_s14 = sshll.u32 %s659_s5, 4  ;;  %s480_s14 = int_to_ptr.vmem [resolvable:$true] %s479_s14 }
  0x26   :  { %v51_v47 = vrot.slane %v46_v45, %v50_v44  ;;  %v55_v48 = vrot.slane %v46_v45, %v54_v46  ;;  %v520_v6 = vld [vmem:[%s850_s6] ss:$0 sm:$0xff]  ;;  %s632_s4 = scalar_lea.vmem %s480_s14, 128  ;;  %p637_p1 = scmp.lt.s32.totalorder %s480_s14, %s480_s14 }
  0x27   :  { %563 = vmatpush3.bf16.msra.mxu0 %v625_v37  ;;  %p633_p0 = scmp.ne.s32.totalorder %s480_s14, %s632_s4  ;;  %p638_p2 = scmp.lt.s32.totalorder %s632_s4, %s632_s4 }
  0x28   :  { %544 = vmatpush3.bf16.msra.mxu1 %v623_v34  ;;  %564 = vmatprep.subr.bf16.mxu0 %v657_v36 }
  0x29   :  { %p639_p3 = por %p638_p2, %p637_p1 }
  0x2b   :  { %565 = vmatpush3.bf16.msra.mxu0 %v626_v38  ;;  %p640_p4 = pnand %p639_p3, %p633_p0 }
  0x2c   :  { %566 = vmatprep.subr.bf16.mxu0 %v657_v36 }
  0x2f   :  { %567 = vmatpush3.bf16.msra.mxu0 %v627_v39 }
  0x30   :  { %568 = vmatprep.subr.bf16.mxu0 %v657_v36 }
  0x33   :  { %569 = vmatpush3.bf16.msra.mxu0 %v628_v40 }
  0x34   :  { %570 = vmatprep.subr.bf16.mxu0 %v657_v36 }
  0x37   :  { %571 = vmatpush3.bf16.msra.mxu0 %v629_v41 }
  0x38   :  { %572 = vmatprep.subr.bf16.mxu0 %v657_v36 }
  0x3b   :  { %573 = vmatpush3.bf16.msra.mxu0 %v630_v59 }
  0x3c   :  { %574 = vmatprep.subr.bf16.mxu0 %v657_v36 }
  0x3f   :  { %575 = vmatpush3.bf16.msra.mxu0 %v631_v60 }
  0xf5   :  { %v172_v49 = vpop.f32.mrb[0].mxu0 }
  0xf6   :  { %v173_v50 = vadd.f32 %v172_v49, %v51_v47  ;;  %v174_v51 = vpop.f32.mrb[1].mxu0 }
  0xf7   :  { %v175_v52 = vadd.f32 %v174_v51, %v55_v48  ;;  %v176_v53 = vpop.f32.mrb[2].mxu0 }
  0xf8   :  { %v179_v54 = vmax.f32 %v173_v50, 0.0  ;;  %v177_v55 = vpop.f32.mrb[3].mxu0 }
  0xf9   :  { %v180_v56 = vmax.f32 %v175_v52, 0.0 }
  0xfa   :  { %v181_v58 = vpack.c.bf16 %v179_v54, %v179_v54 }
  0xfb   :  { %v182_v57 = vpack.c.bf16 %v180_v56, %v180_v56 }
  0xfd   :  { %350 = vmatprep.mubr.bf16.mxu1 %v182_v57 }
  0xfe   :  { %351 = vmatmul.mubr.bf16.vlgmr.msra.gmra.mrb[0].mxu1 %v181_v58 }
 0x1d1   :  { %v545_v61 = vpop.f32.mrb[0].mxu1 }
 0x1d2   :  { %v546_v63 = vpop.f32.mrb[1].mxu1 }
 0x1d3   :  { %v547_v0 = vadd.f32 %v546_v63, %v545_v61  ;;  %v548_v1 = vpop.f32.mrb[2].mxu1 }
 0x1d4   :  { %v549_v2 = vpop.f32.mrb[3].mxu1 }
 0x1d5   :  { %v353_v3 = vadd.f32 %v547_v0, %v503_v62 }
 0x1d7   :  { %v358_v4 = vmax.f32 %v353_v3, 0.0 }
 0x1d9   :  { %v359_v5 = vpack.c.bf16 %v358_v4, %v358_v4 }
 0x1db   :  { %577 = vmatmul.mubr.bf16.vlgmr.msra.gmra.mrb[4].mxu0 %v359_v5 }
 0x2ae   :  { %v465_v7 = vpop.f32.mrb[4].mxu0 }
 0x2af   :  { %v466_v8 = vadd.f32 %v520_v6, %v465_v7  ;;  %v578_v9 = vpop.f32.mrb[5].mxu0 }
 0x2b0   :  { %v468_v10 = vpop.f32.mrb[6].mxu0 }
 0x2b1   :  { %v579_v11 = vpop.f32.mrb[7].mxu0  ;;  %472 = vst.msk [vmem:[#allocation2] sm:$0xff] %vm471_vm1, %v466_v8 }
 0x2b2   :  { %643 = shalt.err (!%p640_p4)
}
 0x2b3   :  { %s644_s6 = scalar_lea.hbm %s851_s7, 128 }
 0x2b4   :  { %p645_p5 = scmp.ne.s32.totalorder %s851_s7, %s644_s6  ;;  %p648_p6 = scmp.lt.u32.totalorder %s644_s6, %s851_s7 }
 0x2b6   :  { %p650_p7 = pnand %p648_p6, %p645_p5 }
 0x2b8   :  { %653 = shalt.err (!%p650_p7)
}
 0x2b9   :  { %482 = dma.vmem_to_hbm [thread:$0]  %s480_s14, 128, %s851_s7, [#allocation3]  }
 0x2ba   :  { %654 = dma.done.wait [#allocation3], 128  }
 0x2bb   :  { %655 = vsyncadd [#allocation3], 4294967168 }
 0x2bc   :  { %486 = vsyncpa [#allocation3], 1 }

</bundles_post_ra>
